<compile_context>
chip_gen: v7x
topology: tpu7x:2x2x1
jax: 0.10.0
libtpu: 0.0.40
codegen_flags: <defaults>
</compile_context>

<pallas_src>
import jax
import jax.numpy as jnp
from jax.experimental import pallas as pl
from jax.experimental.pallas import tpu as pltpu

LANE = 128     # lane width (last dim)
SUBLANE = 8    # f32/bf16-safe sublane multiple (second-to-last dim)


def _round_up(x, m):
    return ((x + m - 1) // m) * m


def _linear_kernel(x_ref, w_ref, b_ref, o_ref):
    # x_ref: (TM, K) native dtype    w_ref: (K, TN) compute dtype (bf16)
    # b_ref: (1, TN) f32             o_ref: (TM, TN) out dtype
    # Cast on the VPU (hidden under the feature DMA) instead of a wrapper pass.
    x = x_ref[...].astype(w_ref.dtype)
    acc = jnp.dot(x, w_ref[...], preferred_element_type=jnp.float32)
    o_ref[...] = (acc + b_ref[...]).astype(o_ref.dtype)


def prepare_linear_params(weight, bias, *, compute_dtype=jnp.bfloat16):
    """One-time parameter prep (OFF the hot path).

    weight: [num_classes, feat_dim] (PyTorch layout), bias: [num_classes].
    Returns (w_t, b2d, num_classes) with:
      w_t : [feat_dim, Npad]  pre-transposed, lane-padded, cast to compute dtype
      b2d : [1, Npad]         f32, lane-padded
    """
    num_classes, feat_dim = weight.shape
    n_pad = _round_up(num_classes, LANE)
    w_t = jnp.zeros((feat_dim, n_pad), compute_dtype)
    w_t = w_t.at[:, :num_classes].set(weight.T.astype(compute_dtype))
    b2d = jnp.zeros((1, n_pad), jnp.float32)
    b2d = b2d.at[:, :num_classes].set(bias.astype(jnp.float32))
    return w_t, b2d, num_classes


def linear_classifier_fwd(features, w_t, b2d, num_classes, *,
                          block_m=512, block_n=512, keep_padded=False):
    """Hot path: one pallas_call.  features: [B, feat_dim] (any float dtype)."""
    B, K = features.shape
    n_pad = w_t.shape[1]
    out_dtype = features.dtype

    # Batch tile: multiple of 8, capped at block_m.  If everything would fit in
    # a single grid step but the batch is large enough to split, split it so
    # v7x's two TensorCores both get work (harmless ~0.35us/step elsewhere).
    tm = min(block_m, _round_up(B, SUBLANE))
    if pl.cdiv(B, tm) < 2 and B > SUBLANE:
        tm = _round_up(pl.cdiv(B, 2), SUBLANE)

    # Class tile: multiple of 128; streams the weight for large heads.
    tn = min(n_pad, _round_up(block_n, LANE))

    grid = (pl.cdiv(B, tm), pl.cdiv(n_pad, tn))

    x_sz = jnp.dtype(features.dtype).itemsize
    w_sz = jnp.dtype(w_t.dtype).itemsize
    o_sz = jnp.dtype(out_dtype).itemsize

    # Live VMEM: double-buffered x / w / b tiles + double-buffered output tile.
    vmem_need = (2 * tm * K * x_sz + 2 * K * tn * w_sz
                 + 2 * tn * 4 + 2 * tm * tn * o_sz)
    vmem_limit = int(min(100 * 1024 * 1024, max(2 * vmem_need + (1 << 20), 8 << 20)))

    cost = pl.CostEstimate(
        flops=2 * B * K * n_pad,
        transcendentals=0,
        bytes_accessed=(B * K * x_sz + w_t.size * w_sz + b2d.size * 4
                        + B * n_pad * o_sz),
    )

    out = pl.pallas_call(
        _linear_kernel,
        out_shape=jax.ShapeDtypeStruct((B, n_pad), out_dtype),
        grid=grid,
        in_specs=[
            # Feature tile: constant across the inner (class) axis -> not
            # re-fetched; streams (double-buffered) along the batch axis.
            pl.BlockSpec((tm, K), lambda i, j: (i, 0)),
            # Weight / bias tiles stream along the class axis.
            pl.BlockSpec((K, tn), lambda i, j: (0, j)),
            pl.BlockSpec((1, tn), lambda i, j: (0, j)),
        ],
        out_specs=pl.BlockSpec((tm, tn), lambda i, j: (i, j)),
        compiler_params=pltpu.CompilerParams(
            dimension_semantics=("parallel", "parallel"),
            vmem_limit_bytes=vmem_limit,
        ),
        cost_estimate=cost,
    )(features, w_t, b2d)

    if keep_padded:
        # Consumer accepts the 128-lane padded slab (e.g. argmax over classes
        # with -inf on the pad is still correct since pads are exactly bias=0
        # columns) -> skip the extra HBM slice pass.
        return out
    return out[:, :num_classes]


def linear_classifier(features, weight, bias, *, compute_dtype=jnp.bfloat16):
    """Convenience wrapper matching PyTorch semantics: features @ weight.T + bias.

    For repeated calls, run prepare_linear_params() once and call
    linear_classifier_fwd() directly so parameter prep stays off the hot path.
    """
    w_t, b2d, n = prepare_linear_params(weight, bias, compute_dtype=compute_dtype)
    return linear_classifier_fwd(features, w_t, b2d, n)


if __name__ == "__main__":
    # Small, module-consistent shapes: feat_dim=512, num_classes=10, batch=8.
    batch, feat_dim, num_classes = 8, 512, 10

    key = jax.random.PRNGKey(0)
    kx, kw, kb = jax.random.split(key, 3)

    # Deterministic init mimicking nn.Linear's uniform(-1/sqrt(fan_in), ...).
    bound = 1.0 / (feat_dim ** 0.5)
    weight = jax.random.uniform(kw, (num_classes, feat_dim), jnp.float32, -bound, bound)
    bias = jax.random.uniform(kb, (num_classes,), jnp.float32, -bound, bound)
    features = jax.random.normal(kx, (batch, feat_dim), jnp.float32)

    # One-time parameter prep (transpose/pad/cast), then the single-call hot path.
    w_t, b2d, n_cls = prepare_linear_params(weight, bias, compute_dtype=jnp.bfloat16)
    out = linear_classifier_fwd(features, w_t, b2d, n_cls)
    out = jax.block_until_ready(out)

    # Reference of the PyTorch semantics in full f32 (kernel uses bf16 weights /
    # in-kernel bf16 cast with f32 MXU accumulation, hence loosened tolerance).
    ref = features @ weight.T + bias
    assert out.shape == (batch, num_classes)
    assert out.dtype == features.dtype
    assert jnp.allclose(out, ref, atol=2e-2, rtol=2e-2)

    print("KERNEL_OK")
</pallas_src>

<mosaic_0001>
module attributes {stable_mosaic.version = 11 : i64} {
  func.func @_linear_kernel(%arg0: i32, %arg1: i32, %arg2: memref<8x512xf32, #tpu.memory_space<vmem>>, %arg3: memref<512x128xbf16, #tpu.memory_space<vmem>>, %arg4: memref<1x128xf32, #tpu.memory_space<vmem>>, %arg5: memref<8x128xf32, #tpu.memory_space<vmem>>) attributes {dimension_semantics = [#tpu.dimension_semantics<parallel>, #tpu.dimension_semantics<parallel>], iteration_bounds = array<i64: 1, 1>, scalar_prefetch = 0 : i64, scratch_operands = 0 : i64, tpu.core_type = #tpu.core_type<tc>, window_params = [{transform_indices = @transform_0, window_bounds = array<i64: 8, 512>}, {transform_indices = @transform_1, window_bounds = array<i64: 512, 128>}, {transform_indices = @transform_2, window_bounds = array<i64: 1, 128>}, {transform_indices = @transform_3, window_bounds = array<i64: 8, 128>}]} {
    %c0 = arith.constant 0 : index
    %c0_0 = arith.constant 0 : index
    %0 = vector.load %arg2[%c0, %c0_0] : memref<8x512xf32, #tpu.memory_space<vmem>>, vector<8x512xf32>
    %1 = arith.truncf %0 : vector<8x512xf32> to vector<8x512xbf16>
    %c0_1 = arith.constant 0 : index
    %c0_2 = arith.constant 0 : index
    %2 = vector.load %arg3[%c0_1, %c0_2] : memref<512x128xbf16, #tpu.memory_space<vmem>>, vector<512x128xbf16>
    %cst = arith.constant dense<0.000000e+00> : vector<8x128xf32>
    %3 = tpu.matmul %1, %2, %cst {dimension_numbers = #tpu.dot_dimension_numbers<[1], [0], [0], [1], [0, 0, 1, 1], [], []>} : vector<8x512xbf16>, vector<512x128xbf16>, vector<8x128xf32> -> vector<8x128xf32>
    %c0_3 = arith.constant 0 : index
    %c0_4 = arith.constant 0 : index
    %4 = vector.load %arg4[%c0_3, %c0_4] : memref<1x128xf32, #tpu.memory_space<vmem>>, vector<1x128xf32>
    %5 = vector.broadcast %4 : vector<1x128xf32> to vector<8x128xf32>
    %6 = arith.addf %3, %5 : vector<8x128xf32>
    %c0_5 = arith.constant 0 : index
    %c0_6 = arith.constant 0 : index
    %7 = vector.load %arg5[%c0_5, %c0_6] : memref<8x128xf32, #tpu.memory_space<vmem>>, vector<8x128xf32>
    tpu.vector_store %arg5[%c0_5, %c0_6], %6 {strides = array<i32>} : memref<8x128xf32, #tpu.memory_space<vmem>>, vector<8x128xf32>,
    return
  }
  func.func @transform_0(%arg0: i32, %arg1: i32) -> (i32, i32) {
    %c0_i32 = arith.constant 0 : i32
    %c0_i32_0 = arith.constant 0 : i32
    return %arg0, %c0_i32 : i32, i32
  }
  func.func @transform_1(%arg0: i32, %arg1: i32) -> (i32, i32) {
    %c0_i32 = arith.constant 0 : i32
    %c0_i32_0 = arith.constant 0 : i32
    return %c0_i32, %arg1 : i32, i32
  }
  func.func @transform_2(%arg0: i32, %arg1: i32) -> (i32, i32) {
    %c0_i32 = arith.constant 0 : i32
    %c0_i32_0 = arith.constant 0 : i32
    return %c0_i32, %arg1 : i32, i32
  }
  func.func @transform_3(%arg0: i32, %arg1: i32) -> (i32, i32) {
    %c0_i32 = arith.constant 0 : i32
    return %arg0, %arg1 : i32, i32
  }
}

</mosaic_0001>

<bundles_post_ra>
// kernel: tpu_custom_call.1
= control target key start
LH: loop header
LB: loop body
LE: loop exit
PB: predicated region body
PF: predicated region fallthrough
CT: control target
= control target key end

     0   :  { %8 = vsyncpa [#allocation3], 0  ;;  %s667_s0 = inlined_call_operand.hbm [shape: f32[8,512], index: 0, kind: input, shape index: {}]   ;;  %s668_s1 = inlined_call_operand.hbm [shape: bf16[512,128], index: 1, kind: input, shape index: {}]   ;;  %s669_s2 = inlined_call_operand.vmem [shape: f32[1,128], index: 2, kind: input, shape index: {}]   ;;  %s670_s3 = inlined_call_operand.hbm [shape: f32[8,128], index: 3, kind: output, shape index: {}]  }
   0x1   :  { %9 = vsyncpa [#allocation6], 0 }
   0x2   :  { %10 = vsyncpa [#allocation4], 0  ;;  %s596_s12 = smov [#allocation2]   ;;  %s597_s14 = smov [#allocation5]  }
   0x3   :  { %s17_s13 = sshll.u32 %s596_s12, 4  ;;  %s26_s15 = sshll.u32 %s597_s14, 4  ;;  %s18_s13 = int_to_ptr.vmem [resolvable:$true] %s17_s13  ;;  %s621_s15 = int_to_ptr.vmem [resolvable:$true] %s26_s15 }
   0x4   :  { %s524_s18 = scalar_lea.hbm %s667_s0, 512 }
   0x5   :  { %p525_p0 = scmp.ne.s32.totalorder %s667_s0, %s524_s18  ;;  %p528_p1 = scmp.lt.u32.totalorder %s524_s18, %s667_s0 }
   0x7   :  { %p530_p2 = pnand %p528_p1, %p525_p0 }
   0x9   :  { %533 = shalt.err (!%p530_p2)
}
   0xa   :  { %s534_s23 = scalar_lea.vmem %s18_s13, 512  ;;  %p539_p4 = scmp.lt.s32.totalorder %s18_s13, %s18_s13 }
   0xb   :  { %p535_p3 = scmp.ne.s32.totalorder %s18_s13, %s534_s23  ;;  %p540_p5 = scmp.lt.s32.totalorder %s534_s23, %s534_s23 }
   0xd   :  { %p541_p6 = por %p540_p5, %p539_p4 }
   0xf   :  { %p542_p7 = pnand %p541_p6, %p535_p3 }
  0x11   :  { %545 = shalt.err (!%p542_p7)
}
  0x12   :  { %20 = dma.hbm_to_vmem [thread:$0]  %s667_s0, 512, %s18_s13, [#allocation3]  }
  0x13   :  { %s546_s28 = scalar_lea.hbm %s668_s1, 4096 }
  0x14   :  { %p547_p8 = scmp.ne.s32.totalorder %s668_s1, %s546_s28  ;;  %p550_p9 = scmp.lt.u32.totalorder %s546_s28, %s668_s1 }
  0x16   :  { %p552_p10 = pnand %p550_p9, %p547_p8 }
  0x18   :  { %555 = shalt.err (!%p552_p10)
}
  0x19   :  { %s556_s6 = scalar_lea.vmem %s621_s15, 4096  ;;  %p561_p12 = scmp.lt.s32.totalorder %s621_s15, %s621_s15 }
  0x1a   :  { %p557_p11 = scmp.ne.s32.totalorder %s621_s15, %s556_s6  ;;  %p562_p13 = scmp.lt.s32.totalorder %s556_s6, %s556_s6 }
  0x1c   :  { %p563_p0 = por %p562_p13, %p561_p12 }
  0x1e   :  { %p564_p1 = pnand %p563_p0, %p557_p11 }
  0x20   :  { %567 = shalt.err (!%p564_p1)
}
  0x21   :  { %s598_s0 = smov 64   ;;  %s599_s7 = smov 4  }
  0x22   :  { %32 = dma.hbm_to_vmem [thread:$0]  %s668_s1, 4096, %s621_s15, [#allocation6], %s598_s0, %s598_s0, %s599_s7  }
  0x23   :  { %590 = dma.done.wait [#allocation3], 512  }
  0x24   :  { %591 = vsyncadd [#allocation3], 4294966784 }
  0x25   :  { %592 = dma.done.wait [#allocation6], 4096  }
  0x26   :  { %593 = vsyncadd [#allocation6], 4294963200  ;;  %v492_v0 = vld [vmem:[#allocation5 + $0x40] sm:$0xff]   ;;  %v496_v4 = vld [vmem:[#allocation5 + $0x48] sm:$0xff]   ;;  %s600_s11 = smov [#allocation7]  }
  0x27   :  { %v493_v1 = vld [vmem:[#allocation5 + $0xc0] sm:$0xff]   ;;  %443 = vmatprep.subr.bf16.mxu0 %v492_v0  ;;  %v497_v5 = vld [vmem:[#allocation5 + $0xc8] sm:$0xff]   ;;  %v500_v8 = vld [vmem:[#allocation5 + $0x50] sm:$0xff]   ;;  %s400_s12 = sshll.u32 %s600_s11, 4  ;;  %s401_s12 = int_to_ptr.vmem [resolvable:$true] %s400_s12 }
  0x28   :  { %v494_v2 = vld [vmem:[#allocation5] sm:$0xff]   ;;  %465 = vmatprep.subr.bf16.mxu1 %v493_v1  ;;  %v498_v6 = vld [vmem:[#allocation5 + $0x8] sm:$0xff]   ;;  %v501_v9 = vld [vmem:[#allocation5 + $0xd0] sm:$0xff]   ;;  %s568_s13 = scalar_lea.vmem %s401_s12, 128  ;;  %p573_p3 = scmp.lt.s32.totalorder %s401_s12, %s401_s12 }
  0x29   :  { %v495_v3 = vld [vmem:[#allocation5 + $0x80] sm:$0xff]   ;;  %444 = vmatpush3.bf16.msra.mxu0 %v494_v2  ;;  %v499_v7 = vld [vmem:[#allocation5 + $0x88] sm:$0xff]   ;;  %v502_v10 = vld [vmem:[#allocation5 + $0x10] sm:$0xff]   ;;  %p569_p2 = scmp.ne.s32.totalorder %s401_s12, %s568_s13  ;;  %p574_p4 = scmp.lt.s32.totalorder %s568_s13, %s568_s13 }
  0x2a   :  { %466 = vmatpush3.bf16.msra.mxu1 %v495_v3  ;;  %445 = vmatprep.subr.bf16.mxu0 %v496_v4  ;;  %v503_v11 = vld [vmem:[#allocation5 + $0x90] sm:$0xff]   ;;  %v504_v12 = vld [vmem:[#allocation5 + $0x58] sm:$0xff]   ;;  %v508_v16 = vld [vmem:[#allocation5 + $0x60] sm:$0xff]  }
  0x2b   :  { %467 = vmatprep.subr.bf16.mxu1 %v497_v5  ;;  %v505_v13 = vld [vmem:[#allocation5 + $0xd8] sm:$0xff]   ;;  %v509_v17 = vld [vmem:[#allocation5 + $0xe0] sm:$0xff]   ;;  %v512_v20 = vld [vmem:[#allocation5 + $0x68] sm:$0xff]   ;;  %p575_p5 = por %p574_p4, %p573_p3 }
  0x2c   :  { %v506_v14 = vld [vmem:[#allocation5 + $0x18] sm:$0xff]   ;;  %v510_v18 = vld [vmem:[#allocation5 + $0x20] sm:$0xff]   ;;  %v513_v21 = vld [vmem:[#allocation5 + $0xe8] sm:$0xff]  }
  0x2d   :  { %446 = vmatpush3.bf16.msra.mxu0 %v498_v6  ;;  %v507_v15 = vld [vmem:[#allocation5 + $0x98] sm:$0xff]   ;;  %v511_v19 = vld [vmem:[#allocation5 + $0xa0] sm:$0xff]   ;;  %v514_v22 = vld [vmem:[#allocation5 + $0x28] sm:$0xff]   ;;  %p576_p6 = pnand %p575_p5, %p569_p2 }
  0x2e   :  { %468 = vmatpush3.bf16.msra.mxu1 %v499_v7  ;;  %447 = vmatprep.subr.bf16.mxu0 %v500_v8  ;;  %v515_v23 = vld [vmem:[#allocation5 + $0xa8] sm:$0xff]   ;;  %v516_v24 = vld [vmem:[#allocation5 + $0x70] sm:$0xff]   ;;  %v520_v28 = vld [vmem:[#allocation5 + $0x78] sm:$0xff]  }
  0x2f   :  { %469 = vmatprep.subr.bf16.mxu1 %v501_v9  ;;  %v517_v25 = vld [vmem:[#allocation5 + $0xf0] sm:$0xff]   ;;  %v521_v29 = vld [vmem:[#allocation5 + $0xf8] sm:$0xff]   ;;  %v43_v32 = vld [vmem:[#allocation2 + $0x8] sm:$0xff] }
  0x30   :  { %v518_v26 = vld [vmem:[#allocation5 + $0x30] sm:$0xff]   ;;  %v522_v30 = vld [vmem:[#allocation5 + $0x38] sm:$0xff]   ;;  %v42_v34 = vld [vmem:[#allocation2] sm:$0xff]  ;;  %v47_v35 = vpack.c.bf16 %v43_v32, %v43_v32 }
  0x31   :  { %448 = vmatpush3.bf16.msra.mxu0 %v502_v10  ;;  %v519_v27 = vld [vmem:[#allocation5 + $0xb0] sm:$0xff]   ;;  %v523_v31 = vld [vmem:[#allocation5 + $0xb8] sm:$0xff]   ;;  %v46_v37 = vpack.c.bf16 %v42_v34, %v42_v34  ;;  %v410_v42 = vld [vmem:[%s669_s2] ss:$0 sm:$0xff] }
  0x32   :  { %470 = vmatpush3.bf16.msra.mxu1 %v503_v11  ;;  %449 = vmatprep.subr.bf16.mxu0 %v504_v12  ;;  %v45_v33 = vld [vmem:[#allocation2 + $0x18] sm:$0xff]  ;;  %v44_v38 = vld [vmem:[#allocation2 + $0x10] sm:$0xff] }
  0x33   :  { %471 = vmatprep.subr.bf16.mxu1 %v505_v13  ;;  %v49_v36 = vpack.c.bf16 %v45_v33, %v45_v33  ;;  %v48_v39 = vpack.c.bf16 %v44_v38, %v44_v38  ;;  %345 = vmatprep.mubr.bf16.mxu0 %v47_v35 }
  0x35   :  { %450 = vmatpush3.bf16.msra.mxu0 %v506_v14  ;;  %385 = vmatprep.mubr.bf16.mxu1 %v49_v36 }
  0x36   :  { %472 = vmatpush3.bf16.msra.mxu1 %v507_v15  ;;  %451 = vmatprep.subr.bf16.mxu0 %v508_v16 }
  0x37   :  { %473 = vmatprep.subr.bf16.mxu1 %v509_v17 }
  0x39   :  { %452 = vmatpush3.bf16.msra.mxu0 %v510_v18 }
  0x3a   :  { %474 = vmatpush3.bf16.msra.mxu1 %v511_v19  ;;  %453 = vmatprep.subr.bf16.mxu0 %v512_v20 }
  0x3b   :  { %475 = vmatprep.subr.bf16.mxu1 %v513_v21 }
  0x3d   :  { %454 = vmatpush3.bf16.msra.mxu0 %v514_v22 }
  0x3e   :  { %476 = vmatpush3.bf16.msra.mxu1 %v515_v23  ;;  %455 = vmatprep.subr.bf16.mxu0 %v516_v24 }
  0x3f   :  { %477 = vmatprep.subr.bf16.mxu1 %v517_v25 }
  0x41   :  { %456 = vmatpush3.bf16.msra.mxu0 %v518_v26 }
  0x42   :  { %478 = vmatpush3.bf16.msra.mxu1 %v519_v27  ;;  %457 = vmatprep.subr.bf16.mxu0 %v520_v28 }
  0x43   :  { %479 = vmatprep.subr.bf16.mxu1 %v521_v29 }
  0x45   :  { %458 = vmatpush3.bf16.msra.mxu0 %v522_v30 }
  0x46   :  { %480 = vmatpush3.bf16.msra.mxu1 %v523_v31 }
  0x48   :  { %346 = vmatmul.mubr.bf16.vlgmr.msra.gmra.mrb[0].mxu0 %v46_v37 }
  0x49   :  { %386 = vmatmul.mubr.bf16.vlgmr.msra.gmra.mrb[0].mxu1 %v48_v39 }
 0x11b   :  { %v459_v40 = vpop.f32.mrb[0].mxu0 }
 0x11c   :  { %v481_v41 = vpop.f32.mrb[0].mxu1  ;;  %v460_v43 = vpop.f32.mrb[1].mxu0 }
 0x11d   :  { %v482_v44 = vpop.f32.mrb[1].mxu1  ;;  %v461_v45 = vadd.f32 %v460_v43, %v459_v40  ;;  %v462_v47 = vpop.f32.mrb[2].mxu0 }
 0x11e   :  { %v483_v46 = vadd.f32 %v482_v44, %v481_v41  ;;  %v484_v48 = vpop.f32.mrb[2].mxu1  ;;  %v463_v49 = vpop.f32.mrb[3].mxu0 }
 0x11f   :  { %v485_v50 = vpop.f32.mrb[3].mxu1  ;;  %v348_v51 = vadd.f32 %v461_v45, %v410_v42 }
 0x121   :  { %v388_v52 = vadd.f32 %v483_v46, %v348_v51 }
 0x123   :  { %393 = vst [vmem:[#allocation7] sm:$0xff] %v388_v52 }
 0x124   :  { %579 = shalt.err (!%p576_p6)
}
 0x125   :  { %s580_s15 = scalar_lea.hbm %s670_s3, 128 }
 0x126   :  { %p581_p7 = scmp.ne.s32.totalorder %s670_s3, %s580_s15  ;;  %p584_p8 = scmp.lt.u32.totalorder %s580_s15, %s670_s3 }
 0x128   :  { %p586_p9 = pnand %p584_p8, %p581_p7 }
 0x12a   :  { %589 = shalt.err (!%p586_p9)
}
 0x12b   :  { %403 = dma.vmem_to_hbm [thread:$0]  %s401_s12, 128, %s670_s3, [#allocation4]  }
 0x12c   :  { %594 = dma.done.wait [#allocation4], 128  }
 0x12d   :  { %595 = vsyncadd [#allocation4], 4294967168 }
 0x12e   :  { %407 = vsyncpa [#allocation3], 1 }
 0x12f   :  { %408 = vsyncpa [#allocation6], 1 }
 0x130   :  { %409 = vsyncpa [#allocation4], 1 }

</bundles_post_ra>
